<compile_context>
chip_gen: v5e
topology: v5e:2x2
jax: 0.10.0
libtpu: 0.0.40
codegen_flags: <defaults>
</compile_context>

<pallas_src>
import math

import jax
import jax.numpy as jnp
import numpy as np
from jax import lax
from jax.experimental import pallas as pl
from jax.experimental.pallas import tpu as pltpu

# 3x3 taps that survive NetGRAPHNew.nullify_3d_corners (corners are zeroed).
_TAPS = ((0, 1), (1, 0), (1, 1), (1, 2), (2, 1))


def _round_up(x, m):
    return (x + m - 1) // m * m


# ------------------------------- Pallas kernel -------------------------------
def _graph_kernel(p_ref, w1_ref, b1_ref, w2_ref, b2_ref, w3_ref, b3_ref,
                  w4_ref, b4_ref, w5_ref, b5_ref, w6_ref, b6_ref, out_ref):
    # conv1: cross-shaped 3x3 conv as a single im2col matmul; bias folded in.
    x = jnp.dot(p_ref[...], w1_ref[...], preferred_element_type=jnp.float32)
    x = jnp.maximum(x + b1_ref[...], 0.0)

    # conv2..conv5: 1x1 convs -> (TM,128)x(128,128) matmuls + ReLU.
    for w_ref, b_ref in ((w2_ref, b2_ref), (w3_ref, b3_ref),
                         (w4_ref, b4_ref), (w5_ref, b5_ref)):
        x = jnp.maximum(
            jnp.dot(x, w_ref[...], preferred_element_type=jnp.float32)
            + b_ref[...], 0.0)

    # conv6: noch -> 1 as VPU multiply + lane reduction (avoid N=1 matmul).
    y = jnp.sum(x * w6_ref[...], axis=-1)            # (TM,)
    out_ref[...] = y[None, :] + b6_ref[...]          # lane-dense (1, TM) store


# --------------------------------- wrapper -----------------------------------
def net_graph_new_forward(graph_nchw, kp):
    """Returns (squeeze(graph_values), cat([speeds, graph_values], dim=1))."""
    B, Cin, H, W = graph_nchw.shape
    graph = graph_nchw.astype(jnp.float32)

    K = kp['w1'].shape[0]            # padded im2col depth (>= 5*Cin)
    K0 = 5 * Cin

    # NCHW -> NHWC; the 3x3 conv's zero-padding is folded directly into the
    # 5-tap cross im2col patch matrix (one row per output pixel).
    x_nhwc = jnp.transpose(graph, (0, 2, 3, 1))
    xpad = jnp.pad(x_nhwc, ((0, 0), (1, 1), (1, 1), (0, 0)))
    patches = jnp.concatenate(
        [xpad[:, dh:dh + H, dw:dw + W, :] for (dh, dw) in _TAPS], axis=-1)

    M = B * H * W
    # Row tiling: a single block for small problems; >=2 parallel blocks once
    # the problem is big enough (keeps both v7x TensorCores busy, and each
    # (TM, 128) f32 activation tile stays far below the 32 MiB scoped VMEM).
    TM = _round_up(M, 128) if M <= 256 else 256
    M_pad = _round_up(M, TM)

    p = patches.reshape(M, K0)
    p = jnp.pad(p, ((0, M_pad - M), (0, K - K0)))

    weights = (kp['w1'], kp['b1'], kp['w2'], kp['b2'], kp['w3'], kp['b3'],
               kp['w4'], kp['b4'], kp['w5'], kp['b5'], kp['w6'], kp['b6'])

    def _full_spec(a):
        return pl.BlockSpec(a.shape, lambda i, _nd=a.ndim: (0,) * _nd)

    out = pl.pallas_call(
        _graph_kernel,
        out_shape=jax.ShapeDtypeStruct((1, M_pad), jnp.float32),
        grid=(M_pad // TM,),
        in_specs=[pl.BlockSpec((TM, K), lambda i: (i, 0))]
                + [_full_spec(a) for a in weights],
        out_specs=pl.BlockSpec((1, TM), lambda i: (0, i)),
        compiler_params=pltpu.CompilerParams(
            dimension_semantics=("parallel",)),
    )(p, *weights)

    graph_values = out.reshape(M_pad)[:M].reshape(B, 1, H, W)   # NCHW, C=1
    speeds = graph[:, 0:1, :, :]
    output = jnp.concatenate([speeds, graph_values], axis=1)
    return jnp.squeeze(graph_values), output


# ----------------------- parameter init (deterministic) ----------------------
def _conv_init(key, kh, kw, cin, cout):
    k1, k2 = jax.random.split(key)
    fan_in = cin * kh * kw
    bound = 1.0 / math.sqrt(fan_in)
    w = jax.random.uniform(k1, (kh, kw, cin, cout), jnp.float32, -bound, bound)
    b = jax.random.uniform(k2, (cout,), jnp.float32, -bound, bound)
    return w, b


def init_params(key, input_ch, noch):
    """Raw (PyTorch-equivalent) parameters; conv1 in HWIO, 1x1s as matrices."""
    keys = jax.random.split(key, 6)
    w1, b1 = _conv_init(keys[0], 3, 3, input_ch, noch)
    for (i, j) in ((0, 0), (0, 2), (2, 0), (2, 2)):   # nullify_3d_corners
        w1 = w1.at[i, j].set(0.0)
    params = {'w1': w1, 'b1': b1}
    for idx, name in enumerate(('2', '3', '4', '5')):
        w, b = _conv_init(keys[1 + idx], 1, 1, noch, noch)
        params['w' + name] = w[0, 0]          # (noch_in, noch_out)
        params['b' + name] = b
    w6, b6 = _conv_init(keys[5], 1, 1, noch, 1)
    params['w6'] = w6[0, 0]                   # (noch, 1)
    params['b6'] = b6                         # (1,)
    return params


def pack_params(params, input_ch):
    """Zero-pad channels to multiples of 128 and pack into kernel layout.

    Both rows and columns of w2..w5 / w6 and all biases are zero-padded so the
    padded lanes stay exactly zero through the ReLU chain.
    """
    noch = params['b1'].shape[0]
    C = _round_up(noch, 128)
    K0 = 5 * input_ch
    K = _round_up(K0, 128)

    w1 = jnp.stack([params['w1'][dh, dw] for (dh, dw) in _TAPS])  # (5,Cin,noch)
    w1 = w1.reshape(K0, noch)
    kp = {
        'w1': jnp.pad(w1, ((0, K - K0), (0, C - noch))),          # (K, C)
        'b1': jnp.pad(params['b1'], (0, C - noch)).reshape(1, C),
        'w6': jnp.pad(params['w6'][:, 0], (0, C - noch)).reshape(1, C),
        'b6': params['b6'].reshape(1, 1),
    }
    for name in ('2', '3', '4', '5'):
        kp['w' + name] = jnp.pad(params['w' + name],
                                 ((0, C - noch), (0, C - noch)))
        kp['b' + name] = jnp.pad(params['b' + name],
                                 (0, C - noch)).reshape(1, C)
    return kp


# ------------------------------ pure-JAX reference ---------------------------
def ref_forward(graph_nchw, params):
    x = jnp.transpose(graph_nchw.astype(jnp.float32), (0, 2, 3, 1))  # NHWC
    y = lax.conv_general_dilated(
        x, params['w1'], (1, 1), 'SAME',
        dimension_numbers=('NHWC', 'HWIO', 'NHWC')) + params['b1']
    y = jnp.maximum(y, 0.0)
    for wk, bk in (('w2', 'b2'), ('w3', 'b3'), ('w4', 'b4'), ('w5', 'b5')):
        y = jnp.maximum(jnp.einsum('bhwc,cn->bhwn', y, params[wk]) + params[bk],
                        0.0)
    y = jnp.einsum('bhwc,cn->bhwn', y, params['w6']) + params['b6']  # (B,H,W,1)
    graph_values = jnp.transpose(y, (0, 3, 1, 2))                    # (B,1,H,W)
    speeds = graph_nchw[:, 0:1, :, :].astype(jnp.float32)
    output = jnp.concatenate([speeds, graph_values], axis=1)
    return jnp.squeeze(graph_values), output


if __name__ == "__main__":
    B, Cin, H, W = 2, 2, 8, 8   # NetGRAPHNew default input_ch=2
    noch = 100                  # num_output_channels=100

    key = jax.random.PRNGKey(0)
    kparam, kx = jax.random.split(key)
    params = init_params(kparam, Cin, noch)
    kernel_params = pack_params(params, Cin)
    graph = jax.random.normal(kx, (B, Cin, H, W), dtype=jnp.float32)

    fwd = jax.jit(net_graph_new_forward)
    gv_sq, output = fwd(graph, kernel_params)
    jax.block_until_ready((gv_sq, output))

    gv_ref, out_ref = ref_forward(graph, params)
    np.testing.assert_allclose(np.asarray(gv_sq), np.asarray(gv_ref),
                               rtol=1e-4, atol=1e-4)
    np.testing.assert_allclose(np.asarray(output), np.asarray(out_ref),
                               rtol=1e-4, atol=1e-4)

    print("KERNEL_OK")
</pallas_src>

<mosaic_0001>
module attributes {stable_mosaic.version = 11 : i64} {
  func.func @_graph_kernel(%arg0: i32, %arg1: memref<128x128xf32, #tpu.memory_space<vmem>>, %arg2: memref<128x128xf32, #tpu.memory_space<vmem>>, %arg3: memref<1x128xf32, #tpu.memory_space<vmem>>, %arg4: memref<128x128xf32, #tpu.memory_space<vmem>>, %arg5: memref<1x128xf32, #tpu.memory_space<vmem>>, %arg6: memref<128x128xf32, #tpu.memory_space<vmem>>, %arg7: memref<1x128xf32, #tpu.memory_space<vmem>>, %arg8: memref<128x128xf32, #tpu.memory_space<vmem>>, %arg9: memref<1x128xf32, #tpu.memory_space<vmem>>, %arg10: memref<128x128xf32, #tpu.memory_space<vmem>>, %arg11: memref<1x128xf32, #tpu.memory_space<vmem>>, %arg12: memref<1x128xf32, #tpu.memory_space<vmem>>, %arg13: memref<1x1xf32, #tpu.memory_space<vmem>>, %arg14: memref<1x128xf32, #tpu.memory_space<vmem>>) attributes {dimension_semantics = [#tpu.dimension_semantics<parallel>], iteration_bounds = array<i64: 1>, scalar_prefetch = 0 : i64, scratch_operands = 0 : i64, tpu.core_type = #tpu.core_type<tc>, window_params = [{transform_indices = @transform_0, window_bounds = array<i64: 128, 128>}, {pipeline_mode = #tpu.pipeline_mode<synchronous>, transform_indices = @transform_1, window_bounds = array<i64: 128, 128>}, {pipeline_mode = #tpu.pipeline_mode<synchronous>, transform_indices = @transform_2, window_bounds = array<i64: 1, 128>}, {pipeline_mode = #tpu.pipeline_mode<synchronous>, transform_indices = @transform_3, window_bounds = array<i64: 128, 128>}, {pipeline_mode = #tpu.pipeline_mode<synchronous>, transform_indices = @transform_4, window_bounds = array<i64: 1, 128>}, {pipeline_mode = #tpu.pipeline_mode<synchronous>, transform_indices = @transform_5, window_bounds = array<i64: 128, 128>}, {pipeline_mode = #tpu.pipeline_mode<synchronous>, transform_indices = @transform_6, window_bounds = array<i64: 1, 128>}, {pipeline_mode = #tpu.pipeline_mode<synchronous>, transform_indices = @transform_7, window_bounds = array<i64: 128, 128>}, {pipeline_mode = #tpu.pipeline_mode<synchronous>, transform_indices = @transform_8, window_bounds = array<i64: 1, 128>}, {pipeline_mode = #tpu.pipeline_mode<synchronous>, transform_indices = @transform_9, window_bounds = array<i64: 128, 128>}, {pipeline_mode = #tpu.pipeline_mode<synchronous>, transform_indices = @transform_10, window_bounds = array<i64: 1, 128>}, {pipeline_mode = #tpu.pipeline_mode<synchronous>, transform_indices = @transform_11, window_bounds = array<i64: 1, 128>}, {pipeline_mode = #tpu.pipeline_mode<synchronous>, transform_indices = @transform_12, window_bounds = array<i64: 1, 1>}, {transform_indices = @transform_13, window_bounds = array<i64: 1, 128>}]} {
    %c0 = arith.constant 0 : index
    %c0_0 = arith.constant 0 : index
    %0 = vector.load %arg1[%c0, %c0_0] : memref<128x128xf32, #tpu.memory_space<vmem>>, vector<128x128xf32>
    %c0_1 = arith.constant 0 : index
    %c0_2 = arith.constant 0 : index
    %1 = vector.load %arg2[%c0_1, %c0_2] : memref<128x128xf32, #tpu.memory_space<vmem>>, vector<128x128xf32>
    %cst = arith.constant dense<0.000000e+00> : vector<128x128xf32>
    %2 = tpu.matmul %0, %1, %cst {dimension_numbers = #tpu.dot_dimension_numbers<[1], [0], [0], [1], [0, 0, 1, 1], [], []>} : vector<128x128xf32>, vector<128x128xf32>, vector<128x128xf32> -> vector<128x128xf32>
    %c0_3 = arith.constant 0 : index
    %c0_4 = arith.constant 0 : index
    %3 = vector.load %arg3[%c0_3, %c0_4] : memref<1x128xf32, #tpu.memory_space<vmem>>, vector<1x128xf32>
    %4 = vector.broadcast %3 : vector<1x128xf32> to vector<128x128xf32>
    %5 = arith.addf %2, %4 : vector<128x128xf32>
    %cst_5 = arith.constant 0.000000e+00 : f32
    %6 = vector.broadcast %cst_5 : f32 to vector<128x128xf32>
    %7 = arith.maximumf %5, %6 : vector<128x128xf32>
    %c0_6 = arith.constant 0 : index
    %c0_7 = arith.constant 0 : index
    %8 = vector.load %arg4[%c0_6, %c0_7] : memref<128x128xf32, #tpu.memory_space<vmem>>, vector<128x128xf32>
    %cst_8 = arith.constant dense<0.000000e+00> : vector<128x128xf32>
    %9 = tpu.matmul %7, %8, %cst_8 {dimension_numbers = #tpu.dot_dimension_numbers<[1], [0], [0], [1], [0, 0, 1, 1], [], []>} : vector<128x128xf32>, vector<128x128xf32>, vector<128x128xf32> -> vector<128x128xf32>
    %c0_9 = arith.constant 0 : index
    %c0_10 = arith.constant 0 : index
    %10 = vector.load %arg5[%c0_9, %c0_10] : memref<1x128xf32, #tpu.memory_space<vmem>>, vector<1x128xf32>
    %11 = vector.broadcast %10 : vector<1x128xf32> to vector<128x128xf32>
    %12 = arith.addf %9, %11 : vector<128x128xf32>
    %cst_11 = arith.constant 0.000000e+00 : f32
    %13 = vector.broadcast %cst_11 : f32 to vector<128x128xf32>
    %14 = arith.maximumf %12, %13 : vector<128x128xf32>
    %c0_12 = arith.constant 0 : index
    %c0_13 = arith.constant 0 : index
    %15 = vector.load %arg6[%c0_12, %c0_13] : memref<128x128xf32, #tpu.memory_space<vmem>>, vector<128x128xf32>
    %cst_14 = arith.constant dense<0.000000e+00> : vector<128x128xf32>
    %16 = tpu.matmul %14, %15, %cst_14 {dimension_numbers = #tpu.dot_dimension_numbers<[1], [0], [0], [1], [0, 0, 1, 1], [], []>} : vector<128x128xf32>, vector<128x128xf32>, vector<128x128xf32> -> vector<128x128xf32>
    %c0_15 = arith.constant 0 : index
    %c0_16 = arith.constant 0 : index
    %17 = vector.load %arg7[%c0_15, %c0_16] : memref<1x128xf32, #tpu.memory_space<vmem>>, vector<1x128xf32>
    %18 = vector.broadcast %17 : vector<1x128xf32> to vector<128x128xf32>
    %19 = arith.addf %16, %18 : vector<128x128xf32>
    %cst_17 = arith.constant 0.000000e+00 : f32
    %20 = vector.broadcast %cst_17 : f32 to vector<128x128xf32>
    %21 = arith.maximumf %19, %20 : vector<128x128xf32>
    %c0_18 = arith.constant 0 : index
    %c0_19 = arith.constant 0 : index
    %22 = vector.load %arg8[%c0_18, %c0_19] : memref<128x128xf32, #tpu.memory_space<vmem>>, vector<128x128xf32>
    %cst_20 = arith.constant dense<0.000000e+00> : vector<128x128xf32>
    %23 = tpu.matmul %21, %22, %cst_20 {dimension_numbers = #tpu.dot_dimension_numbers<[1], [0], [0], [1], [0, 0, 1, 1], [], []>} : vector<128x128xf32>, vector<128x128xf32>, vector<128x128xf32> -> vector<128x128xf32>
    %c0_21 = arith.constant 0 : index
    %c0_22 = arith.constant 0 : index
    %24 = vector.load %arg9[%c0_21, %c0_22] : memref<1x128xf32, #tpu.memory_space<vmem>>, vector<1x128xf32>
    %25 = vector.broadcast %24 : vector<1x128xf32> to vector<128x128xf32>
    %26 = arith.addf %23, %25 : vector<128x128xf32>
    %cst_23 = arith.constant 0.000000e+00 : f32
    %27 = vector.broadcast %cst_23 : f32 to vector<128x128xf32>
    %28 = arith.maximumf %26, %27 : vector<128x128xf32>
    %c0_24 = arith.constant 0 : index
    %c0_25 = arith.constant 0 : index
    %29 = vector.load %arg10[%c0_24, %c0_25] : memref<128x128xf32, #tpu.memory_space<vmem>>, vector<128x128xf32>
    %cst_26 = arith.constant dense<0.000000e+00> : vector<128x128xf32>
    %30 = tpu.matmul %28, %29, %cst_26 {dimension_numbers = #tpu.dot_dimension_numbers<[1], [0], [0], [1], [0, 0, 1, 1], [], []>} : vector<128x128xf32>, vector<128x128xf32>, vector<128x128xf32> -> vector<128x128xf32>
    %c0_27 = arith.constant 0 : index
    %c0_28 = arith.constant 0 : index
    %31 = vector.load %arg11[%c0_27, %c0_28] : memref<1x128xf32, #tpu.memory_space<vmem>>, vector<1x128xf32>
    %32 = vector.broadcast %31 : vector<1x128xf32> to vector<128x128xf32>
    %33 = arith.addf %30, %32 : vector<128x128xf32>
    %cst_29 = arith.constant 0.000000e+00 : f32
    %34 = vector.broadcast %cst_29 : f32 to vector<128x128xf32>
    %35 = arith.maximumf %33, %34 : vector<128x128xf32>
    %c0_30 = arith.constant 0 : index
    %c0_31 = arith.constant 0 : index
    %36 = vector.load %arg12[%c0_30, %c0_31] : memref<1x128xf32, #tpu.memory_space<vmem>>, vector<1x128xf32>
    %37 = vector.broadcast %36 : vector<1x128xf32> to vector<128x128xf32>
    %38 = arith.mulf %35, %37 : vector<128x128xf32>
    %cst_32 = arith.constant dense<0.000000e+00> : vector<128xf32>
    %39 = vector.multi_reduction <add>, %38, %cst_32 [1] : vector<128x128xf32> to vector<128xf32>
    %40 = vector.shape_cast %39 : vector<128xf32> to vector<1x128xf32>
    %c0_33 = arith.constant 0 : index
    %c0_34 = arith.constant 0 : index
    %41 = vector.load %arg13[%c0_33, %c0_34] : memref<1x1xf32, #tpu.memory_space<vmem>>, vector<1x1xf32>
    %42 = vector.broadcast %41 : vector<1x1xf32> to vector<1x128xf32>
    %43 = arith.addf %40, %42 : vector<1x128xf32>
    %c0_35 = arith.constant 0 : index
    %c0_36 = arith.constant 0 : index
    %44 = vector.load %arg14[%c0_35, %c0_36] : memref<1x128xf32, #tpu.memory_space<vmem>>, vector<1x128xf32>
    tpu.vector_store %arg14[%c0_35, %c0_36], %43 {strides = array<i32>} : memref<1x128xf32, #tpu.memory_space<vmem>>, vector<1x128xf32>,
    return
  }
  func.func @transform_0(%arg0: i32) -> (i32, i32) {
    %c0_i32 = arith.constant 0 : i32
    %c0_i32_0 = arith.constant 0 : i32
    return %arg0, %c0_i32 : i32, i32
  }
  func.func @transform_1(%arg0: i32) -> (i32, i32) {
    %c0_i32 = arith.constant 0 : i32
    %c0_i32_0 = arith.constant 0 : i32
    %c0_i32_1 = arith.constant 0 : i32
    return %c0_i32, %c0_i32_0 : i32, i32
  }
  func.func @transform_2(%arg0: i32) -> (i32, i32) {
    %c0_i32 = arith.constant 0 : i32
    %c0_i32_0 = arith.constant 0 : i32
    %c0_i32_1 = arith.constant 0 : i32
    return %c0_i32, %c0_i32_0 : i32, i32
  }
  func.func @transform_3(%arg0: i32) -> (i32, i32) {
    %c0_i32 = arith.constant 0 : i32
    %c0_i32_0 = arith.constant 0 : i32
    %c0_i32_1 = arith.constant 0 : i32
    return %c0_i32, %c0_i32_0 : i32, i32
  }
  func.func @transform_4(%arg0: i32) -> (i32, i32) {
    %c0_i32 = arith.constant 0 : i32
    %c0_i32_0 = arith.constant 0 : i32
    %c0_i32_1 = arith.constant 0 : i32
    return %c0_i32, %c0_i32_0 : i32, i32
  }
  func.func @transform_5(%arg0: i32) -> (i32, i32) {
    %c0_i32 = arith.constant 0 : i32
    %c0_i32_0 = arith.constant 0 : i32
    %c0_i32_1 = arith.constant 0 : i32
    return %c0_i32, %c0_i32_0 : i32, i32
  }
  func.func @transform_6(%arg0: i32) -> (i32, i32) {
    %c0_i32 = arith.constant 0 : i32
    %c0_i32_0 = arith.constant 0 : i32
    %c0_i32_1 = arith.constant 0 : i32
    return %c0_i32, %c0_i32_0 : i32, i32
  }
  func.func @transform_7(%arg0: i32) -> (i32, i32) {
    %c0_i32 = arith.constant 0 : i32
    %c0_i32_0 = arith.constant 0 : i32
    %c0_i32_1 = arith.constant 0 : i32
    return %c0_i32, %c0_i32_0 : i32, i32
  }
  func.func @transform_8(%arg0: i32) -> (i32, i32) {
    %c0_i32 = arith.constant 0 : i32
    %c0_i32_0 = arith.constant 0 : i32
    %c0_i32_1 = arith.constant 0 : i32
    return %c0_i32, %c0_i32_0 : i32, i32
  }
  func.func @transform_9(%arg0: i32) -> (i32, i32) {
    %c0_i32 = arith.constant 0 : i32
    %c0_i32_0 = arith.constant 0 : i32
    %c0_i32_1 = arith.constant 0 : i32
    return %c0_i32, %c0_i32_0 : i32, i32
  }
  func.func @transform_10(%arg0: i32) -> (i32, i32) {
    %c0_i32 = arith.constant 0 : i32
    %c0_i32_0 = arith.constant 0 : i32
    %c0_i32_1 = arith.constant 0 : i32
    return %c0_i32, %c0_i32_0 : i32, i32
  }
  func.func @transform_11(%arg0: i32) -> (i32, i32) {
    %c0_i32 = arith.constant 0 : i32
    %c0_i32_0 = arith.constant 0 : i32
    %c0_i32_1 = arith.constant 0 : i32
    return %c0_i32, %c0_i32_0 : i32, i32
  }
  func.func @transform_12(%arg0: i32) -> (i32, i32) {
    %c0_i32 = arith.constant 0 : i32
    %c0_i32_0 = arith.constant 0 : i32
    %c0_i32_1 = arith.constant 0 : i32
    return %c0_i32, %c0_i32_0 : i32, i32
  }
  func.func @transform_13(%arg0: i32) -> (i32, i32) {
    %c0_i32 = arith.constant 0 : i32
    %c0_i32_0 = arith.constant 0 : i32
    return %c0_i32, %arg0 : i32, i32
  }
}

</mosaic_0001>

<bundles_post_ra>
// kernel: net_graph_new_forward.1
= control target key start
LH: loop header
LB: loop body
LE: loop exit
PB: predicated region body
PF: predicated region fallthrough
CT: control target
= control target key end

     0   :  { %vm663_vm0 = vcmask 130112   ;;  %vm667_vm1 = vcmask 195712   ;;  %vm671_vm2 = vcmask 261312   ;;  %vm675_vm3 = vcmask 326912   ;;  %s1317_s1 = inlined_call_operand.vmem [shape: f32[128,128], index: 1, kind: input, shape index: {}]   ;;  %s1318_s2 = inlined_call_operand.vmem [shape: f32[1,128], index: 2, kind: input, shape index: {}]   ;;  %s1319_s0 = inlined_call_operand.vmem [shape: f32[128,128], index: 0, kind: input, shape index: {}]   ;;  %s1320_s3 = inlined_call_operand.vmem [shape: f32[128,128], index: 3, kind: input, shape index: {}]   ;;  %s1321_s4 = inlined_call_operand.vmem [shape: f32[1,128], index: 4, kind: input, shape index: {}]   ;;  %s1322_s5 = inlined_call_operand.vmem [shape: f32[128,128], index: 5, kind: input, shape index: {}]   ;;  %s1323_s6 = inlined_call_operand.vmem [shape: f32[1,128], index: 6, kind: input, shape index: {}]   ;;  %s1324_s7 = inlined_call_operand.vmem [shape: f32[128,128], index: 7, kind: input, shape index: {}]   ;;  %s1325_s8 = inlined_call_operand.vmem [shape: f32[1,128], index: 8, kind: input, shape index: {}]   ;;  %s1326_s9 = inlined_call_operand.vmem [shape: f32[128,128], index: 9, kind: input, shape index: {}]   ;;  %s1327_s10 = inlined_call_operand.vmem [shape: f32[1,128], index: 10, kind: input, shape index: {}]   ;;  %s1328_s11 = inlined_call_operand.vmem [shape: f32[1,128], index: 11, kind: input, shape index: {}]   ;;  %s1329_s12 = inlined_call_operand.<no memory space> [shape: f32[1,1], index: 12, kind: input, shape index: {}]   ;;  %s1330_s13 = inlined_call_operand.vmem [shape: f32[1,128], index: 13, kind: output, shape index: {}]  }
   0x1   :  { %v77_v0 = vld [vmem:[%s1317_s1 + $0x78] sm:$0xff]  ;;  %v76_v1 = vld [vmem:[%s1317_s1 + $0x70] sm:$0xff]  ;;  %v75_v2 = vld [vmem:[%s1317_s1 + $0x68] sm:$0xff]  ;;  %vm679_vm4 = vcmask 392512   ;;  %vm683_vm5 = vcmask 458112   ;;  %vm687_vm6 = vcmask 523712  }
   0x2   :  { %82 = vmatpush.msra.mxu0 %v77_v0  ;;  %727 = vmatpush.msra.mxu1 %v77_v0  ;;  %v74_v3 = vld [vmem:[%s1317_s1 + $0x60] sm:$0xff]  ;;  %v73_v4 = vld [vmem:[%s1317_s1 + $0x58] sm:$0xff]  ;;  %v72_v5 = vld [vmem:[%s1317_s1 + $0x50] sm:$0xff]  ;;  %vm691_vm7 = vcmask 589312   ;;  %vm695_vm8 = vcmask 654912   ;;  %vm699_vm9 = vcmask 720512  }
   0x3   :  { %728 = vmatpush.msra.mxu2 %v77_v0  ;;  %729 = vmatpush.msra.mxu3 %v77_v0  ;;  %v71_v6 = vld [vmem:[%s1317_s1 + $0x48] sm:$0xff]  ;;  %v70_v7 = vld [vmem:[%s1317_s1 + $0x40] sm:$0xff]  ;;  %v69_v8 = vld [vmem:[%s1317_s1 + $0x38] sm:$0xff]  ;;  %vm703_vm10 = vcmask 786112   ;;  %vm707_vm11 = vcmask 851712   ;;  %vm711_vm12 = vcmask 917312  }
   0x4   :  { %83 = vmatpush.msra.mxu0 %v76_v1  ;;  %730 = vmatpush.msra.mxu1 %v76_v1  ;;  %v68_v9 = vld [vmem:[%s1317_s1 + $0x30] sm:$0xff]  ;;  %v67_v10 = vld [vmem:[%s1317_s1 + $0x28] sm:$0xff]  ;;  %v66_v11 = vld [vmem:[%s1317_s1 + $0x20] sm:$0xff]  ;;  %vm715_vm13 = vcmask 982912   ;;  %vm719_vm14 = vcmask 1048512  }
   0x5   :  { %731 = vmatpush.msra.mxu2 %v76_v1  ;;  %732 = vmatpush.msra.mxu3 %v76_v1  ;;  %v65_v12 = vld [vmem:[%s1317_s1 + $0x18] sm:$0xff]  ;;  %v64_v13 = vld [vmem:[%s1317_s1 + $0x10] sm:$0xff]  ;;  %v63_v14 = vld [vmem:[%s1317_s1 + $0x8] sm:$0xff] }
   0x6   :  { %84 = vmatpush.msra.mxu0 %v75_v2  ;;  %733 = vmatpush.msra.mxu1 %v75_v2  ;;  %v62_v15 = vld [vmem:[%s1317_s1] sm:$0xff]  ;;  %v178_v20 = vld [vmem:[%s1320_s3 + $0x78] sm:$0xff]  ;;  %v177_v21 = vld [vmem:[%s1320_s3 + $0x70] sm:$0xff] }
   0x7   :  { %734 = vmatpush.msra.mxu2 %v75_v2  ;;  %735 = vmatpush.msra.mxu3 %v75_v2  ;;  %v46_v16 = vld [vmem:[%s1319_s0] sm:$0xff]  ;;  %v176_v22 = vld [vmem:[%s1320_s3 + $0x68] sm:$0xff]  ;;  %v174_v28 = vld [vmem:[%s1320_s3 + $0x58] sm:$0xff] }
   0x8   :  { %85 = vmatpush.msra.mxu0 %v74_v3  ;;  %736 = vmatpush.msra.mxu1 %v74_v3  ;;  %v50_v17 = vld [vmem:[%s1319_s0 + $0x20] sm:$0xff]  ;;  %v47_v23 = vld [vmem:[%s1319_s0 + $0x8] sm:$0xff]  ;;  %v173_v29 = vld [vmem:[%s1320_s3 + $0x50] sm:$0xff] }
   0x9   :  { %737 = vmatpush.msra.mxu2 %v74_v3  ;;  %738 = vmatpush.msra.mxu3 %v74_v3  ;;  %v54_v18 = vld [vmem:[%s1319_s0 + $0x40] sm:$0xff]  ;;  %v51_v24 = vld [vmem:[%s1319_s0 + $0x28] sm:$0xff]  ;;  %v48_v31 = vld [vmem:[%s1319_s0 + $0x10] sm:$0xff] }
   0xa   :  { %86 = vmatpush.msra.mxu0 %v73_v4  ;;  %739 = vmatpush.msra.mxu1 %v73_v4  ;;  %v58_v19 = vld [vmem:[%s1319_s0 + $0x60] sm:$0xff]  ;;  %v55_v26 = vld [vmem:[%s1319_s0 + $0x48] sm:$0xff]  ;;  %v52_v32 = vld [vmem:[%s1319_s0 + $0x30] sm:$0xff] }
   0xb   :  { %740 = vmatpush.msra.mxu2 %v73_v4  ;;  %741 = vmatpush.msra.mxu3 %v73_v4  ;;  %v175_v25 = vld [vmem:[%s1320_s3 + $0x60] sm:$0xff]  ;;  %v59_v27 = vld [vmem:[%s1319_s0 + $0x68] sm:$0xff]  ;;  %v56_v34 = vld [vmem:[%s1319_s0 + $0x50] sm:$0xff] }
   0xc   :  { %87 = vmatpush.msra.mxu0 %v72_v5  ;;  %742 = vmatpush.msra.mxu1 %v72_v5  ;;  %v172_v30 = vld [vmem:[%s1320_s3 + $0x48] sm:$0xff]  ;;  %v171_v33 = vld [vmem:[%s1320_s3 + $0x40] sm:$0xff]  ;;  %v60_v35 = vld [vmem:[%s1319_s0 + $0x70] sm:$0xff] }
   0xd   :  { %743 = vmatpush.msra.mxu2 %v72_v5  ;;  %744 = vmatpush.msra.mxu3 %v72_v5  ;;  %v170_v36 = vld [vmem:[%s1320_s3 + $0x38] sm:$0xff]  ;;  %v169_v37 = vld [vmem:[%s1320_s3 + $0x30] sm:$0xff]  ;;  %v168_v38 = vld [vmem:[%s1320_s3 + $0x28] sm:$0xff] }
   0xe   :  { %88 = vmatpush.msra.mxu0 %v71_v6  ;;  %745 = vmatpush.msra.mxu1 %v71_v6  ;;  %v49_v39 = vld [vmem:[%s1319_s0 + $0x18] sm:$0xff]  ;;  %v167_v41 = vld [vmem:[%s1320_s3 + $0x20] sm:$0xff]  ;;  %v165_v45 = vld [vmem:[%s1320_s3 + $0x10] sm:$0xff] }
   0xf   :  { %746 = vmatpush.msra.mxu2 %v71_v6  ;;  %747 = vmatpush.msra.mxu3 %v71_v6  ;;  %v53_v40 = vld [vmem:[%s1319_s0 + $0x38] sm:$0xff]  ;;  %v164_v46 = vld [vmem:[%s1320_s3 + $0x8] sm:$0xff]  ;;  %v163_v47 = vld [vmem:[%s1320_s3] sm:$0xff] }
  0x10   :  { %89 = vmatpush.msra.mxu0 %v70_v7  ;;  %748 = vmatpush.msra.mxu1 %v70_v7  ;;  %v57_v42 = vld [vmem:[%s1319_s0 + $0x58] sm:$0xff]  ;;  %v1001_v48 = vld [vmem:[%s1318_s2] ss:$0 sm:$0xff] }
  0x11   :  { %749 = vmatpush.msra.mxu2 %v70_v7  ;;  %750 = vmatpush.msra.mxu3 %v70_v7  ;;  %v61_v43 = vld [vmem:[%s1319_s0 + $0x78] sm:$0xff] }
  0x12   :  { %90 = vmatpush.msra.mxu0 %v69_v8  ;;  %751 = vmatpush.msra.mxu1 %v69_v8  ;;  %v166_v44 = vld [vmem:[%s1320_s3 + $0x18] sm:$0xff] }
  0x13   :  { %752 = vmatpush.msra.mxu2 %v69_v8  ;;  %753 = vmatpush.msra.mxu3 %v69_v8 }
  0x14   :  { %91 = vmatpush.msra.mxu0 %v68_v9  ;;  %754 = vmatpush.msra.mxu1 %v68_v9 }
  0x15   :  { %755 = vmatpush.msra.mxu2 %v68_v9  ;;  %756 = vmatpush.msra.mxu3 %v68_v9 }
  0x16   :  { %92 = vmatpush.msra.mxu0 %v67_v10  ;;  %757 = vmatpush.msra.mxu1 %v67_v10 }
  0x17   :  { %758 = vmatpush.msra.mxu2 %v67_v10  ;;  %759 = vmatpush.msra.mxu3 %v67_v10 }
  0x18   :  { %93 = vmatpush.msra.mxu0 %v66_v11  ;;  %760 = vmatpush.msra.mxu1 %v66_v11 }
  0x19   :  { %761 = vmatpush.msra.mxu2 %v66_v11  ;;  %762 = vmatpush.msra.mxu3 %v66_v11 }
  0x1a   :  { %94 = vmatpush.msra.mxu0 %v65_v12  ;;  %763 = vmatpush.msra.mxu1 %v65_v12 }
  0x1b   :  { %764 = vmatpush.msra.mxu2 %v65_v12  ;;  %765 = vmatpush.msra.mxu3 %v65_v12 }
  0x1c   :  { %95 = vmatpush.msra.mxu0 %v64_v13  ;;  %766 = vmatpush.msra.mxu1 %v64_v13 }
  0x1d   :  { %767 = vmatpush.msra.mxu2 %v64_v13  ;;  %768 = vmatpush.msra.mxu3 %v64_v13 }
  0x1e   :  { %96 = vmatpush.msra.mxu0 %v63_v14  ;;  %769 = vmatpush.msra.mxu1 %v63_v14 }
  0x1f   :  { %770 = vmatpush.msra.mxu2 %v63_v14  ;;  %771 = vmatpush.msra.mxu3 %v63_v14  ;;  %v279_v14 = vld [vmem:[%s1322_s5 + $0x78] sm:$0xff] }
  0x20   :  { %97 = vmatpush.msra.mxu0 %v62_v15  ;;  %772 = vmatpush.msra.mxu1 %v62_v15 }
  0x21   :  { %98 = vmatmul.f32.vlgmr.msra.gmra.mxu0 %v46_v16  ;;  %110 = vmatmul.f32.vlgmr.msra.gmra.mxu1 %v50_v17  ;;  %v277_v16 = vld [vmem:[%s1322_s5 + $0x68] sm:$0xff] }
  0x22   :  { %773 = vmatpush.msra.mxu2 %v62_v15  ;;  %774 = vmatpush.msra.mxu3 %v62_v15  ;;  %v278_v15 = vld [vmem:[%s1322_s5 + $0x70] sm:$0xff] }
  0x23   :  { %122 = vmatmul.f32.vlgmr.msra.gmra.mxu2 %v54_v18  ;;  %134 = vmatmul.f32.vlgmr.msra.gmra.mxu3 %v58_v19 }
  0x24   :  { %183 = vmatpush.msrb.mxu1 %v178_v20  ;;  %284 = vmatpush.msrb.mxu2 %v279_v14  ;;  %v276_v20 = vld [vmem:[%s1322_s5 + $0x60] sm:$0xff] }
  0x26   :  { %184 = vmatpush.msrb.mxu1 %v177_v21  ;;  %285 = vmatpush.msrb.mxu2 %v278_v15  ;;  %v275_v21 = vld [vmem:[%s1322_s5 + $0x58] sm:$0xff] }
  0x28   :  { %185 = vmatpush.msrb.mxu1 %v176_v22  ;;  %286 = vmatpush.msrb.mxu2 %v277_v16  ;;  %v274_v22 = vld [vmem:[%s1322_s5 + $0x50] sm:$0xff]  ;;  %v380_v16 = vld [vmem:[%s1324_s7 + $0x78] sm:$0xff] }
  0x29   :  { %101 = vmatmul.f32.gmra.mxu0 %v47_v23  ;;  %113 = vmatmul.f32.gmra.mxu1 %v51_v24  ;;  %v273_v24 = vld [vmem:[%s1322_s5 + $0x48] sm:$0xff] }
  0x2a   :  { %186 = vmatpush.msrb.mxu1 %v175_v25  ;;  %287 = vmatpush.msrb.mxu2 %v276_v20  ;;  %v378_v20 = vld [vmem:[%s1324_s7 + $0x68] sm:$0xff] }
  0x2b   :  { %125 = vmatmul.f32.gmra.mxu2 %v55_v26  ;;  %137 = vmatmul.f32.gmra.mxu3 %v59_v27 }
  0x2c   :  { %187 = vmatpush.msrb.mxu1 %v174_v28  ;;  %288 = vmatpush.msrb.mxu2 %v275_v21  ;;  %v272_v28 = vld [vmem:[%s1322_s5 + $0x40] sm:$0xff] }
  0x2d   :  { %385 = vmatpush.msrb.mxu3 %v380_v16 }
  0x2e   :  { %188 = vmatpush.msrb.mxu1 %v173_v29  ;;  %289 = vmatpush.msrb.mxu2 %v274_v22  ;;  %v271_v29 = vld [vmem:[%s1322_s5 + $0x38] sm:$0xff]  ;;  %v377_v22 = vld [vmem:[%s1324_s7 + $0x60] sm:$0xff] }
  0x30   :  { %189 = vmatpush.msrb.mxu1 %v172_v30  ;;  %290 = vmatpush.msrb.mxu2 %v273_v24  ;;  %v270_v30 = vld [vmem:[%s1322_s5 + $0x30] sm:$0xff] }
  0x31   :  { %104 = vmatmul.f32.gmra.mxu0 %v48_v31  ;;  %116 = vmatmul.f32.gmra.mxu1 %v52_v32  ;;  %v269_v32 = vld [vmem:[%s1322_s5 + $0x28] sm:$0xff]  ;;  %v375_v24 = vld [vmem:[%s1324_s7 + $0x50] sm:$0xff] }
  0x32   :  { %190 = vmatpush.msrb.mxu1 %v171_v33  ;;  %291 = vmatpush.msrb.mxu2 %v272_v28 }
  0x33   :  { %128 = vmatmul.f32.gmra.mxu2 %v56_v34  ;;  %140 = vmatmul.f32.gmra.mxu3 %v60_v35  ;;  %v268_v34 = vld [vmem:[%s1322_s5 + $0x20] sm:$0xff]  ;;  %v267_v35 = vld [vmem:[%s1322_s5 + $0x18] sm:$0xff] }
  0x34   :  { %191 = vmatpush.msrb.mxu1 %v170_v36  ;;  %292 = vmatpush.msrb.mxu2 %v271_v29  ;;  %v373_v29 = vld [vmem:[%s1324_s7 + $0x40] sm:$0xff] }
  0x36   :  { %192 = vmatpush.msrb.mxu1 %v169_v37  ;;  %293 = vmatpush.msrb.mxu2 %v270_v30  ;;  %v266_v37 = vld [vmem:[%s1322_s5 + $0x10] sm:$0xff]  ;;  %v372_v30 = vld [vmem:[%s1324_s7 + $0x38] sm:$0xff] }
  0x38   :  { %193 = vmatpush.msrb.mxu1 %v168_v38  ;;  %294 = vmatpush.msrb.mxu2 %v269_v32  ;;  %v370_v32 = vld [vmem:[%s1324_s7 + $0x28] sm:$0xff] }
  0x39   :  { %107 = vmatmul.f32.gmra.mxu0 %v49_v39  ;;  %119 = vmatmul.f32.gmra.mxu1 %v53_v40  ;;  %v265_v39 = vld [vmem:[%s1322_s5 + $0x8] sm:$0xff] }
  0x3a   :  { %194 = vmatpush.msrb.mxu1 %v167_v41  ;;  %295 = vmatpush.msrb.mxu2 %v268_v34  ;;  %v264_v41 = vld [vmem:[%s1322_s5] sm:$0xff] }
  0x3b   :  { %131 = vmatmul.f32.gmra.mxu2 %v57_v42  ;;  %143 = vmatmul.f32.gmra.mxu3 %v61_v43 }
  0x3c   :  { %195 = vmatpush.msrb.mxu1 %v166_v44  ;;  %296 = vmatpush.msrb.mxu2 %v267_v35  ;;  %v369_v35 = vld [vmem:[%s1324_s7 + $0x20] sm:$0xff] }
  0x3e   :  { %196 = vmatpush.msrb.mxu1 %v165_v45  ;;  %297 = vmatpush.msrb.mxu2 %v266_v37  ;;  %v368_v37 = vld [vmem:[%s1324_s7 + $0x18] sm:$0xff] }
  0x40   :  { %197 = vmatpush.msrb.mxu1 %v164_v46  ;;  %298 = vmatpush.msrb.mxu2 %v265_v39 }
  0x42   :  { %198 = vmatpush.msrb.mxu1 %v163_v47  ;;  %299 = vmatpush.msrb.mxu2 %v264_v41  ;;  %v366_v41 = vld [vmem:[%s1324_s7 + $0x8] sm:$0xff] }
  0x9e   :  { %v99_v49 = vpop.f32.mrf.mxu0  ;;  %v111_v58 = vpop.f32.mrf.mxu1 }
  0x9f   :  { %v100_v50 = vadd.f32 %v1001_v48, %v99_v49  ;;  %v112_v62 = vadd.f32 %v1001_v48, %v111_v58 }
  0xa1   :  { %v147_v51 = vmax.f32 %v100_v50, 0.0  ;;  %v151_v0 = vmax.f32 %v112_v62, 0.0  ;;  %v1070_v50 = vld [vmem:[%s1321_s4] ss:$0 sm:$0xff] }
  0xa3   :  { %199 = vmatmul.f32.vlgmr.msrb.gmra.mxu1 %v147_v51 }
  0xa6   :  { %v102_v52 = vpop.f32.mrf.mxu0  ;;  %v114_v63 = vpop.f32.mrf.mxu1 }
  0xa7   :  { %v103_v53 = vadd.f32 %v1001_v48, %v102_v52  ;;  %v115_v1 = vadd.f32 %v1001_v48, %v114_v63  ;;  %v123_v7 = vpop.f32.mrf.mxu2  ;;  %v135_v26 = vpop.f32.mrf.mxu3 }
  0xa8   :  { %v124_v10 = vadd.f32 %v1001_v48, %v123_v7  ;;  %v136_v33 = vadd.f32 %v1001_v48, %v135_v26 }
  0xa9   :  { %v148_v54 = vmax.f32 %v103_v53, 0.0  ;;  %v152_v3 = vmax.f32 %v115_v1, 0.0 }
  0xaa   :  { %v155_v12 = vmax.f32 %v124_v10, 0.0  ;;  %v159_v38 = vmax.f32 %v136_v33, 0.0 }
  0xab   :  { %202 = vmatmul.f32.gmra.mxu1 %v148_v54 }
  0xae   :  { %v105_v55 = vpop.f32.mrf.mxu0  ;;  %v117_v2 = vpop.f32.mrf.mxu1 }
  0xaf   :  { %v106_v56 = vadd.f32 %v1001_v48, %v105_v55  ;;  %v118_v4 = vadd.f32 %v1001_v48, %v117_v2  ;;  %v126_v11 = vpop.f32.mrf.mxu2  ;;  %v138_v36 = vpop.f32.mrf.mxu3 }
  0xb0   :  { %v127_v13 = vadd.f32 %v1001_v48, %v126_v11  ;;  %v139_v40 = vadd.f32 %v1001_v48, %v138_v36 }
  0xb1   :  { %v149_v57 = vmax.f32 %v106_v56, 0.0  ;;  %v153_v5 = vmax.f32 %v118_v4, 0.0 }
  0xb2   :  { %v156_v18 = vmax.f32 %v127_v13, 0.0  ;;  %v160_v43 = vmax.f32 %v139_v40, 0.0 }
  0xb3   :  { %205 = vmatmul.f32.gmra.mxu1 %v149_v57 }
  0xb6   :  { %v108_v59 = vpop.f32.mrf.mxu0  ;;  %v120_v6 = vpop.f32.mrf.mxu1 }
  0xb7   :  { %v109_v60 = vadd.f32 %v1001_v48, %v108_v59  ;;  %v121_v8 = vadd.f32 %v1001_v48, %v120_v6  ;;  %v129_v17 = vpop.f32.mrf.mxu2  ;;  %v141_v42 = vpop.f32.mrf.mxu3 }
  0xb8   :  { %v130_v19 = vadd.f32 %v1001_v48, %v129_v17  ;;  %v142_v44 = vadd.f32 %v1001_v48, %v141_v42  ;;  %v379_v17 = vld [vmem:[%s1324_s7 + $0x70] sm:$0xff] }
  0xb9   :  { %v150_v61 = vmax.f32 %v109_v60, 0.0  ;;  %v154_v9 = vmax.f32 %v121_v8, 0.0  ;;  %386 = vmatpush.msrb.mxu3 %v379_v17  ;;  %v481_v17 = vld [vmem:[%s1326_s9 + $0x78] sm:$0xff] }
  0xba   :  { %v157_v23 = vmax.f32 %v130_v19, 0.0  ;;  %v161_v45 = vmax.f32 %v142_v44, 0.0  ;;  %486 = vmatpush.msrb.mxu0 %v481_v17 }
  0xbb   :  { %208 = vmatmul.f32.gmra.mxu1 %v150_v61  ;;  %387 = vmatpush.msrb.mxu3 %v378_v20 }
  0xbd   :  { %388 = vmatpush.msrb.mxu3 %v377_v22 }
  0xbf   :  { %v132_v25 = vpop.f32.mrf.mxu2  ;;  %v144_v46 = vpop.f32.mrf.mxu3 }
  0xc0   :  { %v133_v27 = vadd.f32 %v1001_v48, %v132_v25  ;;  %v145_v47 = vadd.f32 %v1001_v48, %v144_v46 }
  0xc2   :  { %v158_v31 = vmax.f32 %v133_v27, 0.0  ;;  %v162_v49 = vmax.f32 %v145_v47, 0.0  ;;  %v374_v27 = vld [vmem:[%s1324_s7 + $0x48] sm:$0xff] }
  0xc3   :  { %211 = vmatmul.f32.gmra.mxu1 %v151_v0 }
  0xcb   :  { %214 = vmatmul.f32.gmra.mxu1 %v152_v3 }
  0xd3   :  { %217 = vmatmul.f32.gmra.mxu1 %v153_v5 }
  0xdb   :  { %220 = vmatmul.f32.gmra.mxu1 %v154_v9 }
  0xe3   :  { %223 = vmatmul.f32.gmra.mxu1 %v155_v12 }
  0xeb   :  { %226 = vmatmul.f32.gmra.mxu1 %v156_v18 }
  0xf3   :  { %229 = vmatmul.f32.gmra.mxu1 %v157_v23  ;;  %v376_v23 = vld [vmem:[%s1324_s7 + $0x58] sm:$0xff] }
  0xf4   :  { %389 = vmatpush.msrb.mxu3 %v376_v23  ;;  %v478_v23 = vld [vmem:[%s1326_s9 + $0x60] sm:$0xff] }
  0xf6   :  { %390 = vmatpush.msrb.mxu3 %v375_v24  ;;  %v477_v24 = vld [vmem:[%s1326_s9 + $0x58] sm:$0xff] }
  0xf8   :  { %391 = vmatpush.msrb.mxu3 %v374_v27 }
  0xfa   :  { %392 = vmatpush.msrb.mxu3 %v373_v29 }
  0xfb   :  { %232 = vmatmul.f32.gmra.mxu1 %v158_v31  ;;  %v371_v31 = vld [vmem:[%s1324_s7 + $0x30] sm:$0xff] }
  0xfc   :  { %393 = vmatpush.msrb.mxu3 %v372_v30  ;;  %v474_v30 = vld [vmem:[%s1326_s9 + $0x40] sm:$0xff] }
  0xfe   :  { %394 = vmatpush.msrb.mxu3 %v371_v31  ;;  %v473_v31 = vld [vmem:[%s1326_s9 + $0x38] sm:$0xff] }
 0x100   :  { %395 = vmatpush.msrb.mxu3 %v370_v32  ;;  %v472_v32 = vld [vmem:[%s1326_s9 + $0x30] sm:$0xff] }
 0x102   :  { %396 = vmatpush.msrb.mxu3 %v369_v35 }
 0x103   :  { %235 = vmatmul.f32.gmra.mxu1 %v159_v38  ;;  %v367_v38 = vld [vmem:[%s1324_s7 + $0x10] sm:$0xff] }
 0x104   :  { %397 = vmatpush.msrb.mxu3 %v368_v37 }
 0x106   :  { %398 = vmatpush.msrb.mxu3 %v367_v38  ;;  %v469_v38 = vld [vmem:[%s1326_s9 + $0x18] sm:$0xff] }
 0x108   :  { %399 = vmatpush.msrb.mxu3 %v366_v41 }
 0x10b   :  { %238 = vmatmul.f32.gmra.mxu1 %v160_v43  ;;  %v365_v43 = vld [vmem:[%s1324_s7] sm:$0xff] }
 0x10c   :  { %400 = vmatpush.msrb.mxu3 %v365_v43 }
 0x113   :  { %241 = vmatmul.f32.gmra.mxu1 %v161_v45 }
 0x11b   :  { %244 = vmatmul.f32.gmra.mxu1 %v162_v49 }
 0x120   :  { %v200_v51 = vpop.f32.mrf.mxu1 }
 0x121   :  { %v201_v52 = vadd.f32 %v1070_v50, %v200_v51 }
 0x123   :  { %v248_v53 = vmax.f32 %v201_v52, 0.0  ;;  %v1139_v52 = vld [vmem:[%s1323_s6] ss:$0 sm:$0xff] }
 0x125   :  { %300 = vmatmul.f32.vlgmr.msrb.gmra.mxu2 %v248_v53 }
 0x128   :  { %v203_v54 = vpop.f32.mrf.mxu1 }
 0x129   :  { %v204_v55 = vadd.f32 %v1070_v50, %v203_v54 }
 0x12b   :  { %v249_v56 = vmax.f32 %v204_v55, 0.0 }
 0x12d   :  { %303 = vmatmul.f32.gmra.mxu2 %v249_v56 }
 0x130   :  { %v206_v57 = vpop.f32.mrf.mxu1 }
 0x131   :  { %v207_v48 = vadd.f32 %v1070_v50, %v206_v57 }
 0x133   :  { %v250_v58 = vmax.f32 %v207_v48, 0.0 }
 0x135   :  { %306 = vmatmul.f32.gmra.mxu2 %v250_v58 }
 0x138   :  { %v209_v59 = vpop.f32.mrf.mxu1 }
 0x139   :  { %v210_v60 = vadd.f32 %v1070_v50, %v209_v59 }
 0x13b   :  { %v251_v61 = vmax.f32 %v210_v60, 0.0 }
 0x13d   :  { %309 = vmatmul.f32.gmra.mxu2 %v251_v61 }
 0x140   :  { %v212_v62 = vpop.f32.mrf.mxu1 }
 0x141   :  { %v213_v63 = vadd.f32 %v1070_v50, %v212_v62 }
 0x143   :  { %v252_v0 = vmax.f32 %v213_v63, 0.0 }
 0x145   :  { %312 = vmatmul.f32.gmra.mxu2 %v252_v0 }
 0x148   :  { %v215_v1 = vpop.f32.mrf.mxu1 }
 0x149   :  { %v216_v2 = vadd.f32 %v1070_v50, %v215_v1 }
 0x14b   :  { %v253_v3 = vmax.f32 %v216_v2, 0.0 }
 0x14d   :  { %315 = vmatmul.f32.gmra.mxu2 %v253_v3 }
 0x150   :  { %v218_v4 = vpop.f32.mrf.mxu1 }
 0x151   :  { %v219_v5 = vadd.f32 %v1070_v50, %v218_v4 }
 0x153   :  { %v254_v6 = vmax.f32 %v219_v5, 0.0 }
 0x155   :  { %318 = vmatmul.f32.gmra.mxu2 %v254_v6 }
 0x158   :  { %v221_v7 = vpop.f32.mrf.mxu1 }
 0x159   :  { %v222_v8 = vadd.f32 %v1070_v50, %v221_v7 }
 0x15b   :  { %v255_v9 = vmax.f32 %v222_v8, 0.0 }
 0x15d   :  { %321 = vmatmul.f32.gmra.mxu2 %v255_v9 }
 0x160   :  { %v224_v10 = vpop.f32.mrf.mxu1 }
 0x161   :  { %v225_v11 = vadd.f32 %v1070_v50, %v224_v10 }
 0x163   :  { %v256_v12 = vmax.f32 %v225_v11, 0.0 }
 0x165   :  { %324 = vmatmul.f32.gmra.mxu2 %v256_v12 }
 0x168   :  { %v227_v13 = vpop.f32.mrf.mxu1 }
 0x169   :  { %v228_v14 = vadd.f32 %v1070_v50, %v227_v13 }
 0x16b   :  { %v257_v15 = vmax.f32 %v228_v14, 0.0 }
 0x16d   :  { %327 = vmatmul.f32.gmra.mxu2 %v257_v15 }
 0x170   :  { %v230_v18 = vpop.f32.mrf.mxu1 }
 0x171   :  { %v231_v19 = vadd.f32 %v1070_v50, %v230_v18  ;;  %v480_v18 = vld [vmem:[%s1326_s9 + $0x70] sm:$0xff] }
 0x172   :  { %487 = vmatpush.msrb.mxu0 %v480_v18 }
 0x173   :  { %v258_v21 = vmax.f32 %v231_v19, 0.0 }
 0x175   :  { %330 = vmatmul.f32.gmra.mxu2 %v258_v21  ;;  %v479_v21 = vld [vmem:[%s1326_s9 + $0x68] sm:$0xff] }
 0x176   :  { %488 = vmatpush.msrb.mxu0 %v479_v21 }
 0x178   :  { %v233_v25 = vpop.f32.mrf.mxu1  ;;  %489 = vmatpush.msrb.mxu0 %v478_v23 }
 0x179   :  { %v234_v26 = vadd.f32 %v1070_v50, %v233_v25  ;;  %v476_v25 = vld [vmem:[%s1326_s9 + $0x50] sm:$0xff] }
 0x17a   :  { %490 = vmatpush.msrb.mxu0 %v477_v24 }
 0x17b   :  { %v259_v28 = vmax.f32 %v234_v26, 0.0 }
 0x17c   :  { %491 = vmatpush.msrb.mxu0 %v476_v25 }
 0x17d   :  { %333 = vmatmul.f32.gmra.mxu2 %v259_v28  ;;  %v475_v28 = vld [vmem:[%s1326_s9 + $0x48] sm:$0xff] }
 0x17e   :  { %492 = vmatpush.msrb.mxu0 %v475_v28 }
 0x180   :  { %v236_v33 = vpop.f32.mrf.mxu1  ;;  %493 = vmatpush.msrb.mxu0 %v474_v30 }
 0x181   :  { %v237_v34 = vadd.f32 %v1070_v50, %v236_v33  ;;  %v471_v33 = vld [vmem:[%s1326_s9 + $0x28] sm:$0xff] }
 0x182   :  { %494 = vmatpush.msrb.mxu0 %v473_v31 }
 0x183   :  { %v260_v36 = vmax.f32 %v237_v34, 0.0 }
 0x184   :  { %495 = vmatpush.msrb.mxu0 %v472_v32 }
 0x185   :  { %336 = vmatmul.f32.gmra.mxu2 %v260_v36  ;;  %v470_v36 = vld [vmem:[%s1326_s9 + $0x20] sm:$0xff] }
 0x186   :  { %496 = vmatpush.msrb.mxu0 %v471_v33 }
 0x188   :  { %v239_v39 = vpop.f32.mrf.mxu1  ;;  %497 = vmatpush.msrb.mxu0 %v470_v36 }
 0x189   :  { %v240_v40 = vadd.f32 %v1070_v50, %v239_v39  ;;  %v468_v39 = vld [vmem:[%s1326_s9 + $0x10] sm:$0xff] }
 0x18a   :  { %498 = vmatpush.msrb.mxu0 %v469_v38 }
 0x18b   :  { %v261_v42 = vmax.f32 %v240_v40, 0.0 }
 0x18c   :  { %499 = vmatpush.msrb.mxu0 %v468_v39  ;;  %v1232_v39 = vld [vmem:[%s1327_s10] ss:$0 sm:$0xff] }
 0x18d   :  { %339 = vmatmul.f32.gmra.mxu2 %v261_v42  ;;  %v467_v42 = vld [vmem:[%s1326_s9 + $0x8] sm:$0xff] }
 0x18e   :  { %500 = vmatpush.msrb.mxu0 %v467_v42  ;;  %v1238_v42 = vld [vmem:[%s1328_s11] ss:$0 sm:$0xff] }
 0x190   :  { %v242_v44 = vpop.f32.mrf.mxu1 }
 0x191   :  { %v243_v45 = vadd.f32 %v1070_v50, %v242_v44  ;;  %v466_v44 = vld [vmem:[%s1326_s9] sm:$0xff] }
 0x192   :  { %501 = vmatpush.msrb.mxu0 %v466_v44 }
 0x193   :  { %v262_v46 = vmax.f32 %v243_v45, 0.0 }
 0x195   :  { %342 = vmatmul.f32.gmra.mxu2 %v262_v46 }
 0x198   :  { %v245_v47 = vpop.f32.mrf.mxu1 }
 0x199   :  { %v246_v49 = vadd.f32 %v1070_v50, %v245_v47 }
 0x19b   :  { %v263_v51 = vmax.f32 %v246_v49, 0.0 }
 0x19d   :  { %345 = vmatmul.f32.gmra.mxu2 %v263_v51 }
 0x1a8   :  { %v301_v53 = vpop.f32.mrf.mxu2 }
 0x1a9   :  { %v302_v54 = vadd.f32 %v1139_v52, %v301_v53 }
 0x1ab   :  { %v349_v55 = vmax.f32 %v302_v54, 0.0  ;;  %v1208_v54 = vld [vmem:[%s1325_s8] ss:$0 sm:$0xff] }
 0x1ad   :  { %401 = vmatmul.f32.vlgmr.msrb.gmra.mxu3 %v349_v55 }
 0x1b0   :  { %v304_v56 = vpop.f32.mrf.mxu2 }
 0x1b1   :  { %v305_v57 = vadd.f32 %v1139_v52, %v304_v56 }
 0x1b3   :  { %v350_v48 = vmax.f32 %v305_v57, 0.0 }
 0x1b5   :  { %404 = vmatmul.f32.gmra.mxu3 %v350_v48 }
 0x1b8   :  { %v307_v58 = vpop.f32.mrf.mxu2 }
 0x1b9   :  { %v308_v50 = vadd.f32 %v1139_v52, %v307_v58 }
 0x1bb   :  { %v351_v59 = vmax.f32 %v308_v50, 0.0 }
 0x1bd   :  { %407 = vmatmul.f32.gmra.mxu3 %v351_v59 }
 0x1c0   :  { %v310_v60 = vpop.f32.mrf.mxu2 }
 0x1c1   :  { %v311_v61 = vadd.f32 %v1139_v52, %v310_v60 }
 0x1c3   :  { %v352_v62 = vmax.f32 %v311_v61, 0.0 }
 0x1c5   :  { %410 = vmatmul.f32.gmra.mxu3 %v352_v62 }
 0x1c8   :  { %v313_v63 = vpop.f32.mrf.mxu2 }
 0x1c9   :  { %v314_v0 = vadd.f32 %v1139_v52, %v313_v63 }
 0x1cb   :  { %v353_v1 = vmax.f32 %v314_v0, 0.0 }
 0x1cd   :  { %413 = vmatmul.f32.gmra.mxu3 %v353_v1 }
 0x1d0   :  { %v316_v2 = vpop.f32.mrf.mxu2 }
 0x1d1   :  { %v317_v3 = vadd.f32 %v1139_v52, %v316_v2 }
 0x1d3   :  { %v354_v4 = vmax.f32 %v317_v3, 0.0 }
 0x1d5   :  { %416 = vmatmul.f32.gmra.mxu3 %v354_v4 }
 0x1d8   :  { %v319_v5 = vpop.f32.mrf.mxu2 }
 0x1d9   :  { %v320_v6 = vadd.f32 %v1139_v52, %v319_v5 }
 0x1db   :  { %v355_v7 = vmax.f32 %v320_v6, 0.0 }
 0x1dd   :  { %419 = vmatmul.f32.gmra.mxu3 %v355_v7 }
 0x1e0   :  { %v322_v8 = vpop.f32.mrf.mxu2 }
 0x1e1   :  { %v323_v9 = vadd.f32 %v1139_v52, %v322_v8 }
 0x1e3   :  { %v356_v10 = vmax.f32 %v323_v9, 0.0  ;;  %v18_v9 = vstv %s1329_s12 }
 0x1e4   :  { %19 = vst [vmem:[#allocation2] sm:$0x1] %v18_v9 }
 0x1e5   :  { %422 = vmatmul.f32.gmra.mxu3 %v356_v10 }
 0x1e8   :  { %v325_v11 = vpop.f32.mrf.mxu2 }
 0x1e9   :  { %v326_v12 = vadd.f32 %v1139_v52, %v325_v11 }
 0x1eb   :  { %v357_v13 = vmax.f32 %v326_v12, 0.0 }
 0x1ed   :  { %425 = vmatmul.f32.gmra.mxu3 %v357_v13  ;;  %v783_v13 = vmov 0  }
 0x1ee   :  { %776 = vset.pattern.permute.xlu0 %v783_v13 }
 0x1f0   :  { %v328_v14 = vpop.f32.mrf.mxu2 }
 0x1f1   :  { %v329_v15 = vadd.f32 %v1139_v52, %v328_v14  ;;  %v619_v14 = vld [vmem:[#allocation2] sm:$0x1] }
 0x1f2   :  { %622 = vperm.xlu0 %776, %v619_v14  }
 0x1f3   :  { %v358_v16 = vmax.f32 %v329_v15, 0.0 }
 0x1f5   :  { %428 = vmatmul.f32.gmra.mxu3 %v358_v16 }
 0x1f8   :  { %v331_v19 = vpop.f32.mrf.mxu2 }
 0x1f9   :  { %v332_v20 = vadd.f32 %v1139_v52, %v331_v19 }
 0x1fb   :  { %v359_v22 = vmax.f32 %v332_v20, 0.0 }
 0x1fd   :  { %431 = vmatmul.f32.gmra.mxu3 %v359_v22 }
 0x200   :  { %v334_v26 = vpop.f32.mrf.mxu2 }
 0x201   :  { %v335_v27 = vadd.f32 %v1139_v52, %v334_v26 }
 0x203   :  { %v360_v29 = vmax.f32 %v335_v27, 0.0 }
 0x205   :  { %434 = vmatmul.f32.gmra.mxu3 %v360_v29 }
 0x208   :  { %v337_v34 = vpop.f32.mrf.mxu2 }
 0x209   :  { %v338_v35 = vadd.f32 %v1139_v52, %v337_v34 }
 0x20b   :  { %v361_v37 = vmax.f32 %v338_v35, 0.0 }
 0x20d   :  { %437 = vmatmul.f32.gmra.mxu3 %v361_v37 }
 0x210   :  { %v340_v40 = vpop.f32.mrf.mxu2 }
 0x211   :  { %v341_v41 = vadd.f32 %v1139_v52, %v340_v40 }
 0x213   :  { %v362_v43 = vmax.f32 %v341_v41, 0.0 }
 0x215   :  { %440 = vmatmul.f32.gmra.mxu3 %v362_v43 }
 0x218   :  { %v343_v45 = vpop.f32.mrf.mxu2 }
 0x219   :  { %v344_v46 = vadd.f32 %v1139_v52, %v343_v45 }
 0x21b   :  { %v363_v47 = vmax.f32 %v344_v46, 0.0 }
 0x21d   :  { %443 = vmatmul.f32.gmra.mxu3 %v363_v47 }
 0x220   :  { %v346_v49 = vpop.f32.mrf.mxu2 }
 0x221   :  { %v347_v51 = vadd.f32 %v1139_v52, %v346_v49 }
 0x223   :  { %v364_v53 = vmax.f32 %v347_v51, 0.0 }
 0x225   :  { %446 = vmatmul.f32.gmra.mxu3 %v364_v53 }
 0x230   :  { %v402_v55 = vpop.f32.mrf.mxu3 }
 0x231   :  { %v403_v56 = vadd.f32 %v1208_v54, %v402_v55 }
 0x233   :  { %v450_v57 = vmax.f32 %v403_v56, 0.0 }
 0x235   :  { %502 = vmatmul.f32.vlgmr.msrb.gmra.mxu0 %v450_v57 }
 0x238   :  { %v405_v48 = vpop.f32.mrf.mxu3 }
 0x239   :  { %v406_v58 = vadd.f32 %v1208_v54, %v405_v48 }
 0x23b   :  { %v451_v50 = vmax.f32 %v406_v58, 0.0 }
 0x23d   :  { %505 = vmatmul.f32.gmra.mxu0 %v451_v50 }
 0x240   :  { %v408_v59 = vpop.f32.mrf.mxu3 }
 0x241   :  { %v409_v52 = vadd.f32 %v1208_v54, %v408_v59 }
 0x243   :  { %v452_v60 = vmax.f32 %v409_v52, 0.0 }
 0x245   :  { %508 = vmatmul.f32.gmra.mxu0 %v452_v60 }
 0x248   :  { %v411_v61 = vpop.f32.mrf.mxu3 }
 0x249   :  { %v412_v62 = vadd.f32 %v1208_v54, %v411_v61 }
 0x24b   :  { %v453_v63 = vmax.f32 %v412_v62, 0.0 }
 0x24d   :  { %511 = vmatmul.f32.gmra.mxu0 %v453_v63 }
 0x250   :  { %v414_v0 = vpop.f32.mrf.mxu3 }
 0x251   :  { %v415_v1 = vadd.f32 %v1208_v54, %v414_v0 }
 0x253   :  { %v454_v2 = vmax.f32 %v415_v1, 0.0 }
 0x255   :  { %514 = vmatmul.f32.gmra.mxu0 %v454_v2 }
 0x258   :  { %v417_v3 = vpop.f32.mrf.mxu3 }
 0x259   :  { %v418_v4 = vadd.f32 %v1208_v54, %v417_v3 }
 0x25b   :  { %v455_v5 = vmax.f32 %v418_v4, 0.0 }
 0x25d   :  { %517 = vmatmul.f32.gmra.mxu0 %v455_v5 }
 0x260   :  { %v420_v6 = vpop.f32.mrf.mxu3 }
 0x261   :  { %v421_v7 = vadd.f32 %v1208_v54, %v420_v6 }
 0x263   :  { %v456_v8 = vmax.f32 %v421_v7, 0.0 }
 0x265   :  { %520 = vmatmul.f32.gmra.mxu0 %v456_v8 }
 0x268   :  { %v423_v10 = vpop.f32.mrf.mxu3 }
 0x269   :  { %v424_v11 = vadd.f32 %v1208_v54, %v423_v10 }
 0x26b   :  { %v457_v12 = vmax.f32 %v424_v11, 0.0 }
 0x26d   :  { %523 = vmatmul.f32.gmra.mxu0 %v457_v12 }
 0x270   :  { %v426_v15 = vpop.f32.mrf.mxu3 }
 0x271   :  { %v427_v16 = vadd.f32 %v1208_v54, %v426_v15 }
 0x273   :  { %v458_v17 = vmax.f32 %v427_v16, 0.0 }
 0x275   :  { %526 = vmatmul.f32.gmra.mxu0 %v458_v17 }
 0x278   :  { %v429_v18 = vpop.f32.mrf.mxu3 }
 0x279   :  { %v430_v19 = vadd.f32 %v1208_v54, %v429_v18 }
 0x27b   :  { %v459_v20 = vmax.f32 %v430_v19, 0.0 }
 0x27d   :  { %529 = vmatmul.f32.gmra.mxu0 %v459_v20 }
 0x280   :  { %v432_v21 = vpop.f32.mrf.mxu3 }
 0x281   :  { %v433_v22 = vadd.f32 %v1208_v54, %v432_v21 }
 0x283   :  { %v460_v23 = vmax.f32 %v433_v22, 0.0 }
 0x285   :  { %532 = vmatmul.f32.gmra.mxu0 %v460_v23 }
 0x288   :  { %v435_v24 = vpop.f32.mrf.mxu3 }
 0x289   :  { %v436_v25 = vadd.f32 %v1208_v54, %v435_v24 }
 0x28b   :  { %v461_v26 = vmax.f32 %v436_v25, 0.0 }
 0x28d   :  { %535 = vmatmul.f32.gmra.mxu0 %v461_v26 }
 0x290   :  { %v438_v27 = vpop.f32.mrf.mxu3 }
 0x291   :  { %v439_v28 = vadd.f32 %v1208_v54, %v438_v27 }
 0x293   :  { %v462_v29 = vmax.f32 %v439_v28, 0.0 }
 0x295   :  { %538 = vmatmul.f32.gmra.mxu0 %v462_v29 }
 0x298   :  { %v441_v30 = vpop.f32.mrf.mxu3 }
 0x299   :  { %v442_v31 = vadd.f32 %v1208_v54, %v441_v30 }
 0x29b   :  { %v463_v32 = vmax.f32 %v442_v31, 0.0 }
 0x29d   :  { %541 = vmatmul.f32.gmra.mxu0 %v463_v32 }
 0x2a0   :  { %v444_v33 = vpop.f32.mrf.mxu3 }
 0x2a1   :  { %v445_v34 = vadd.f32 %v1208_v54, %v444_v33 }
 0x2a3   :  { %v464_v35 = vmax.f32 %v445_v34, 0.0 }
 0x2a5   :  { %544 = vmatmul.f32.gmra.mxu0 %v464_v35 }
 0x2a8   :  { %v447_v36 = vpop.f32.mrf.mxu3 }
 0x2a9   :  { %v448_v37 = vadd.f32 %v1208_v54, %v447_v36 }
 0x2ab   :  { %v465_v38 = vmax.f32 %v448_v37, 0.0 }
 0x2ad   :  { %547 = vmatmul.f32.gmra.mxu0 %v465_v38 }
 0x2b2   :  { %v503_v40 = vpop.f32.mrf.mxu0 }
 0x2b3   :  { %v504_v41 = vadd.f32 %v1232_v39, %v503_v40 }
 0x2b5   :  { %v551_v43 = vmax.f32 %v504_v41, 0.0 }
 0x2b7   :  { %v571_v44 = vmul.f32 %v1238_v42, %v551_v43 }
 0x2b9   :  { %587 = vadd.xlane.f32.xlu0 %v571_v44 }
 0x2ba   :  { %v506_v45 = vpop.f32.mrf.mxu0 }
 0x2bb   :  { %v507_v46 = vadd.f32 %v1232_v39, %v506_v45 }
 0x2bd   :  { %v552_v47 = vmax.f32 %v507_v46, 0.0 }
 0x2bf   :  { %v572_v49 = vmul.f32 %v1238_v42, %v552_v47 }
 0x2c1   :  { %589 = vadd.xlane.f32.xlu1 %v572_v49 }
 0x2c2   :  { %v509_v51 = vpop.f32.mrf.mxu0 }
 0x2c3   :  { %v510_v53 = vadd.f32 %v1232_v39, %v509_v51 }
 0x2c5   :  { %v553_v54 = vmax.f32 %v510_v53, 0.0  ;;  %v623_v53 = vpop.permute.xlu0 %622 }
 0x2c7   :  { %v573_v55 = vmul.f32 %v1238_v42, %v553_v54 }
 0x2c9   :  { %591 = vadd.xlane.f32.xlu1 %v573_v55  ;;  %v658_v55 = vlaneseq }
 0x2ca   :  { %v512_v56 = vpop.f32.mrf.mxu0 }
 0x2cb   :  { %v513_v57 = vadd.f32 %v1232_v39, %v512_v56 }
 0x2cd   :  { %v554_v48 = vmax.f32 %v513_v57, 0.0 }
 0x2cf   :  { %v574_v58 = vmul.f32 %v1238_v42, %v554_v48  ;;  %v1271_v48 = vperm.slane %v623_v53, 0 }
 0x2d1   :  { %593 = vadd.xlane.f32.xlu2 %v574_v58  ;;  %v1273_v58 = vand.u32 127, %v658_v55 }
 0x2d2   :  { %v515_v50 = vpop.f32.mrf.mxu0 }
 0x2d3   :  { %v516_v59 = vadd.f32 %v1232_v39, %v515_v50  ;;  %v717_v53 = vadd.s32 4294967176, %v1273_v58 }
 0x2d5   :  { %v555_v52 = vmax.f32 %v516_v59, 0.0 }
 0x2d7   :  { %v575_v60 = vmul.f32 %v1238_v42, %v555_v52  ;;  %v665_v52 = vadd.s32 4294967280, %v1273_v58 }
 0x2d9   :  { %595 = vadd.xlane.f32.xlu2 %v575_v60 }
 0x2da   :  { %v518_v61 = vpop.f32.mrf.mxu0 }
 0x2db   :  { %v519_v62 = vadd.f32 %v1232_v39, %v518_v61  ;;  %v669_v61 = vadd.s32 4294967272, %v1273_v58 }
 0x2dd   :  { %v556_v63 = vmax.f32 %v519_v62, 0.0 }
 0x2df   :  { %v576_v0 = vmul.f32 %v1238_v42, %v556_v63 }
 0x2e1   :  { %597 = vadd.xlane.f32.xlu1 %v576_v0 }
 0x2e2   :  { %v521_v1 = vpop.f32.mrf.mxu0 }
 0x2e3   :  { %v522_v2 = vadd.f32 %v1232_v39, %v521_v1  ;;  %v673_v1 = vadd.s32 4294967264, %v1273_v58 }
 0x2e5   :  { %v557_v3 = vmax.f32 %v522_v2, 0.0 }
 0x2e7   :  { %v577_v4 = vmul.f32 %v1238_v42, %v557_v3 }
 0x2e9   :  { %599 = vadd.xlane.f32.xlu2 %v577_v4 }
 0x2ea   :  { %v524_v5 = vpop.f32.mrf.mxu0 }
 0x2eb   :  { %v525_v6 = vadd.f32 %v1232_v39, %v524_v5 }
 0x2ed   :  { %v558_v7 = vmax.f32 %v525_v6, 0.0 }
 0x2ef   :  { %v578_v8 = vmul.f32 %v1238_v42, %v558_v7  ;;  %v677_v7 = vadd.s32 4294967256, %v1273_v58 }
 0x2f1   :  { %601 = vadd.xlane.f32.xlu1 %v578_v8 }
 0x2f2   :  { %v527_v9 = vpop.f32.mrf.mxu0 }
 0x2f3   :  { %v528_v10 = vadd.f32 %v1232_v39, %v527_v9 }
 0x2f5   :  { %v559_v11 = vmax.f32 %v528_v10, 0.0  ;;  %v681_v10 = vadd.s32 4294967248, %v1273_v58 }
 0x2f7   :  { %v579_v12 = vmul.f32 %v1238_v42, %v559_v11 }
 0x2f9   :  { %603 = vadd.xlane.f32.xlu2 %v579_v12 }
 0x2fa   :  { %v530_v13 = vpop.f32.mrf.mxu0 }
 0x2fb   :  { %v531_v14 = vadd.f32 %v1232_v39, %v530_v13  ;;  %v685_v13 = vadd.s32 4294967240, %v1273_v58 }
 0x2fd   :  { %v560_v15 = vmax.f32 %v531_v14, 0.0 }
 0x2ff   :  { %v580_v16 = vmul.f32 %v1238_v42, %v560_v15 }
 0x301   :  { %605 = vadd.xlane.f32.xlu1 %v580_v16  ;;  %v689_v16 = vadd.s32 4294967232, %v1273_v58 }
 0x302   :  { %v533_v17 = vpop.f32.mrf.mxu0 }
 0x303   :  { %v534_v18 = vadd.f32 %v1232_v39, %v533_v17 }
 0x305   :  { %v561_v19 = vmax.f32 %v534_v18, 0.0 }
 0x307   :  { %v581_v20 = vmul.f32 %v1238_v42, %v561_v19 }
 0x309   :  { %607 = vadd.xlane.f32.xlu2 %v581_v20  ;;  %v693_v20 = vadd.s32 4294967224, %v1273_v58 }
 0x30a   :  { %v536_v21 = vpop.f32.mrf.mxu0 }
 0x30b   :  { %v537_v22 = vadd.f32 %v1232_v39, %v536_v21 }
 0x30d   :  { %v562_v23 = vmax.f32 %v537_v22, 0.0 }
 0x30f   :  { %v582_v24 = vmul.f32 %v1238_v42, %v562_v23  ;;  %v697_v23 = vadd.s32 4294967216, %v1273_v58 }
 0x311   :  { %609 = vadd.xlane.f32.xlu1 %v582_v24 }
 0x312   :  { %v539_v25 = vpop.f32.mrf.mxu0 }
 0x313   :  { %v540_v26 = vadd.f32 %v1232_v39, %v539_v25 }
 0x315   :  { %v563_v27 = vmax.f32 %v540_v26, 0.0 }
 0x317   :  { %v583_v28 = vmul.f32 %v1238_v42, %v563_v27 }
 0x319   :  { %611 = vadd.xlane.f32.xlu2 %v583_v28  ;;  %v701_v28 = vadd.s32 4294967208, %v1273_v58 }
 0x31a   :  { %v542_v29 = vpop.f32.mrf.mxu0 }
 0x31b   :  { %v543_v30 = vadd.f32 %v1232_v39, %v542_v29 }
 0x31d   :  { %v564_v31 = vmax.f32 %v543_v30, 0.0 }
 0x31f   :  { %v584_v32 = vmul.f32 %v1238_v42, %v564_v31 }
 0x321   :  { %613 = vadd.xlane.f32.xlu1 %v584_v32  ;;  %v705_v32 = vadd.s32 4294967200, %v1273_v58 }
 0x322   :  { %v545_v33 = vpop.f32.mrf.mxu0 }
 0x323   :  { %v546_v34 = vadd.f32 %v1232_v39, %v545_v33 }
 0x325   :  { %v565_v35 = vmax.f32 %v546_v34, 0.0 }
 0x327   :  { %v585_v36 = vmul.f32 %v1238_v42, %v565_v35 }
 0x329   :  { %615 = vadd.xlane.f32.xlu2 %v585_v36  ;;  %v709_v36 = vadd.s32 4294967192, %v1273_v58 }
 0x32a   :  { %v548_v37 = vpop.f32.mrf.mxu0 }
 0x32b   :  { %v549_v38 = vadd.f32 %v1232_v39, %v548_v37 }
 0x32c   :  { %v588_v39 = vpop.xlane.xlu0 %587 }
 0x32d   :  { %v566_v40 = vmax.f32 %v549_v38, 0.0  ;;  %v626_v59 = vadd.f32 %v1271_v48, %v588_v39 }
 0x32f   :  { %v586_v41 = vmul.f32 %v1238_v42, %v566_v40  ;;  %v661_v42 = vadd.s32 4294967288, %v1273_v58  ;;  %v660_v4 = vperm.slane %v626_v59, %v1273_v58 }
 0x331   :  { %617 = vadd.xlane.f32.xlu0 %v586_v41  ;;  %v713_v41 = vadd.s32 4294967184, %v1273_v58 }
 0x334   :  { %v590_v43 = vpop.xlane.xlu1 %589 }
 0x335   :  { %v627_v50 = vadd.f32 %v1271_v48, %v590_v43 }
 0x337   :  { %v662_v63 = vperm.slane %v627_v50, %v661_v42 }
 0x339   :  { %v664_v9 = vsel %vm663_vm0, %v662_v63, %v660_v4 }
 0x33c   :  { %v592_v45 = vpop.xlane.xlu1 %591 }
 0x33d   :  { %v628_v60 = vadd.f32 %v1271_v48, %v592_v45 }
 0x33f   :  { %v666_v5 = vperm.slane %v628_v60, %v665_v52 }
 0x341   :  { %v668_v15 = vsel %vm667_vm1, %v666_v5, %v664_v9 }
 0x344   :  { %v594_v44 = vpop.xlane.xlu2 %593 }
 0x345   :  { %v629_v62 = vadd.f32 %v1271_v48, %v594_v44 }
 0x347   :  { %v670_v6 = vperm.slane %v629_v62, %v669_v61 }
 0x349   :  { %v672_v18 = vsel %vm671_vm2, %v670_v6, %v668_v15 }
 0x34c   :  { %v596_v46 = vpop.xlane.xlu2 %595 }
 0x34d   :  { %v630_v2 = vadd.f32 %v1271_v48, %v596_v46 }
 0x34f   :  { %v674_v12 = vperm.slane %v630_v2, %v673_v1 }
 0x351   :  { %v676_v26 = vsel %vm675_vm3, %v674_v12, %v672_v18 }
 0x354   :  { %v598_v47 = vpop.xlane.xlu1 %597 }
 0x355   :  { %v631_v8 = vadd.f32 %v1271_v48, %v598_v47 }
 0x357   :  { %v678_v19 = vperm.slane %v631_v8, %v677_v7 }
 0x359   :  { %v680_v34 = vsel %vm679_vm4, %v678_v19, %v676_v26 }
 0x35c   :  { %v600_v49 = vpop.xlane.xlu2 %599 }
 0x35d   :  { %v632_v11 = vadd.f32 %v1271_v48, %v600_v49 }
 0x35f   :  { %v682_v22 = vperm.slane %v632_v11, %v681_v10 }
 0x361   :  { %v684_v38 = vsel %vm683_vm5, %v682_v22, %v680_v34 }
 0x364   :  { %v602_v51 = vpop.xlane.xlu1 %601 }
 0x365   :  { %v633_v14 = vadd.f32 %v1271_v48, %v602_v51 }
 0x367   :  { %v686_v27 = vperm.slane %v633_v14, %v685_v13 }
 0x369   :  { %v688_v44 = vsel %vm687_vm6, %v686_v27, %v684_v38 }
 0x36c   :  { %v604_v54 = vpop.xlane.xlu2 %603 }
 0x36d   :  { %v634_v17 = vadd.f32 %v1271_v48, %v604_v54 }
 0x36f   :  { %v690_v31 = vperm.slane %v634_v17, %v689_v16 }
 0x371   :  { %v692_v46 = vsel %vm691_vm7, %v690_v31, %v688_v44 }
 0x374   :  { %v606_v56 = vpop.xlane.xlu1 %605 }
 0x375   :  { %v635_v21 = vadd.f32 %v1271_v48, %v606_v56 }
 0x377   :  { %v694_v35 = vperm.slane %v635_v21, %v693_v20 }
 0x379   :  { %v696_v49 = vsel %vm695_vm8, %v694_v35, %v692_v46 }
 0x37c   :  { %v608_v57 = vpop.xlane.xlu2 %607 }
 0x37d   :  { %v636_v24 = vadd.f32 %v1271_v48, %v608_v57 }
 0x37f   :  { %v698_v40 = vperm.slane %v636_v24, %v697_v23 }
 0x381   :  { %v700_v54 = vsel %vm699_vm9, %v698_v40, %v696_v49 }
 0x384   :  { %v610_v0 = vpop.xlane.xlu1 %609 }
 0x385   :  { %v637_v29 = vadd.f32 %v1271_v48, %v610_v0 }
 0x387   :  { %v702_v45 = vperm.slane %v637_v29, %v701_v28 }
 0x389   :  { %v704_v57 = vsel %vm703_vm10, %v702_v45, %v700_v54 }
 0x38c   :  { %v612_v3 = vpop.xlane.xlu2 %611 }
 0x38d   :  { %v638_v33 = vadd.f32 %v1271_v48, %v612_v3 }
 0x38f   :  { %v706_v47 = vperm.slane %v638_v33, %v705_v32 }
 0x391   :  { %v708_v42 = vsel %vm707_vm11, %v706_v47, %v704_v57 }
 0x394   :  { %v614_v25 = vpop.xlane.xlu1 %613 }
 0x395   :  { %v639_v37 = vadd.f32 %v1271_v48, %v614_v25 }
 0x397   :  { %v710_v51 = vperm.slane %v639_v37, %v709_v36 }
 0x399   :  { %v712_v50 = vsel %vm711_vm12, %v710_v51, %v708_v42 }
 0x39c   :  { %v616_v30 = vpop.xlane.xlu2 %615 }
 0x39d   :  { %v640_v43 = vadd.f32 %v1271_v48, %v616_v30 }
 0x39f   :  { %v714_v55 = vperm.slane %v640_v43, %v713_v41 }
 0x3a1   :  { %v716_v52 = vsel %vm715_vm13, %v714_v55, %v712_v50 }
 0x3a4   :  { %v618_v56 = vpop.xlane.xlu0 %617 }
 0x3a5   :  { %v641_v39 = vadd.f32 %v1271_v48, %v618_v56 }
 0x3a7   :  { %v718_v59 = vperm.slane %v641_v39, %v717_v53 }
 0x3a9   :  { %v720_v60 = vsel %vm719_vm14, %v718_v59, %v716_v52 }
 0x3aa   :  { %722 = vst [vmem:[%s1330_s13] sm:$0x1] %v720_v60 }

</bundles_post_ra>
